<compile_context>
chip_gen: v6e
topology: v6e:2x2x1
jax: 0.10.0
libtpu: 0.0.40
codegen_flags: <defaults>
</compile_context>

<pallas_src>
import functools

import jax
import jax.numpy as jnp
from jax.experimental import pallas as pl
from jax.experimental.pallas import tpu as pltpu


def _round_up(x: int, m: int) -> int:
    return ((x + m - 1) // m) * m


def _fc_kernel(x_ref, w_ref, b_ref, o_ref, acc_ref):
    """One (tm, tn) output tile, accumulated over the K grid axis.

    x_ref: (tm, tk)   activations tile
    w_ref: (tn, tk)   weight tile in nn.Linear layout (out, in)
    b_ref: (1,  tn)   bias tile
    o_ref: (tm, tn)   output tile
    acc_ref: (tm, tn) f32 accumulator scratch (persists across K steps)
    """
    k = pl.program_id(2)

    @pl.when(k == 0)
    def _():
        acc_ref[...] = jnp.zeros_like(acc_ref)

    # Contract x's last dim with the weight's last dim (== x @ W^T) so the
    # wrapper never has to materialize W^T in HBM.
    acc_ref[...] += jax.lax.dot_general(
        x_ref[...],
        w_ref[...],
        dimension_numbers=(((1,), (1,)), ((), ())),
        preferred_element_type=jnp.float32,
    )

    @pl.when(k == pl.num_programs(2) - 1)
    def _():
        acc = acc_ref[...] + b_ref[...].astype(jnp.float32)
        o_ref[...] = acc.astype(o_ref.dtype)


def _fc_matmul(x2d, weight, bias):
    """y = x2d @ weight^T + bias.

    x2d:    (M, K) real
    weight: (N, K)  -- nn.Linear convention (out_chans, in_chans)
    bias:   (N,)
    returns (M, N) in x2d.dtype
    """
    M, K = x2d.shape
    N = weight.shape[0]
    out_dtype = x2d.dtype

    # Tile sizes: multiples of 8 (sublane) / 128 (lane); 256-friendly for the
    # 2x256^2 MXU on v6e/v7x, 128-friendly for the 4x128^2 MXU on v5e.
    # Conservative sizes keep double-buffered tiles well under v5e's 16 MiB
    # scoped-VMEM default.
    tm = min(256, _round_up(M, 8))
    tn = min(256, _round_up(N, 128))
    tk = min(512, _round_up(K, 128))

    Mp = _round_up(M, tm)
    Kp = _round_up(K, tk)
    Np = _round_up(N, tn)

    xp = x2d if (Mp == M and Kp == K) else jnp.pad(x2d, ((0, Mp - M), (0, Kp - K)))
    wp = weight if (Np == N and Kp == K) else jnp.pad(weight, ((0, Np - N), (0, Kp - K)))
    bp = bias if Np == N else jnp.pad(bias, (0, Np - N))
    bp = bp.reshape(1, Np)

    grid = (Mp // tm, Np // tn, Kp // tk)

    bytes_accessed = (
        Mp * Kp * xp.dtype.itemsize
        + Np * Kp * wp.dtype.itemsize
        + Np * bp.dtype.itemsize
        + Mp * Np * jnp.dtype(out_dtype).itemsize
    )

    out = pl.pallas_call(
        _fc_kernel,
        out_shape=jax.ShapeDtypeStruct((Mp, Np), out_dtype),
        grid=grid,
        in_specs=[
            pl.BlockSpec((tm, tk), lambda i, j, k: (i, k)),   # x
            pl.BlockSpec((tn, tk), lambda i, j, k: (j, k)),   # W (out, in)
            pl.BlockSpec((1, tn), lambda i, j, k: (0, j)),    # bias
        ],
        out_specs=pl.BlockSpec((tm, tn), lambda i, j, k: (i, j)),
        scratch_shapes=[pltpu.VMEM((tm, tn), jnp.float32)],
        compiler_params=pltpu.CompilerParams(
            dimension_semantics=("parallel", "parallel", "arbitrary"),
        ),
        cost_estimate=pl.CostEstimate(
            flops=2 * Mp * Np * Kp,
            transcendentals=0,
            bytes_accessed=bytes_accessed,
        ),
    )(xp, wp, bp)

    if Mp == M and Np == N:
        return out
    return out[:M, :N]


@jax.jit
def fc_forward(x, weight, bias):
    """Equivalent of FC.forward.

    x:      (..., in_chans), real or complex
    weight: (out_chans, in_chans)   -- nn.Linear convention
    bias:   (out_chans,)
    """
    in_chans = weight.shape[1]
    out_chans = weight.shape[0]

    lead_shape = x.shape[:-1]
    x2d = x.reshape(-1, in_chans)
    m_rows = x2d.shape[0]

    if jnp.iscomplexobj(x):
        # Fuse real/imag into a single pallas_call: weight & bias tiles are
        # DMA'd once and shared across both halves of the row axis.
        stacked = jnp.concatenate([jnp.real(x2d), jnp.imag(x2d)], axis=0)
        y = _fc_matmul(stacked, weight, bias)
        y2d = jax.lax.complex(y[:m_rows], y[m_rows:])
    else:
        y2d = _fc_matmul(x2d, weight, bias)

    return y2d.reshape(*lead_shape, out_chans)


if __name__ == "__main__":
    key = jax.random.PRNGKey(0)
    k_x, k_xi, k_w, k_b = jax.random.split(key, 4)

    batch, seq, in_chans, out_chans = 2, 8, 32, 64

    # Deterministic "parameter init" (synthetic, matches nn.Linear shapes).
    weight = jax.random.normal(k_w, (out_chans, in_chans), jnp.float32) * 0.05
    bias = jax.random.normal(k_b, (out_chans,), jnp.float32) * 0.01

    # Real-valued input path.
    x_real = jax.random.normal(k_x, (batch, seq, in_chans), jnp.float32)
    y_real = fc_forward(x_real, weight, bias)
    jax.block_until_ready(y_real)

    # Complex-valued input path (torch.complex branch).
    x_imag = jax.random.normal(k_xi, (batch, seq, in_chans), jnp.float32)
    x_cplx = jax.lax.complex(x_real, x_imag)
    y_cplx = fc_forward(x_cplx, weight, bias)
    jax.block_until_ready(y_cplx)

    # Reference check against plain JAX.
    ref_real = x_real @ weight.T + bias
    ref_imag = x_imag @ weight.T + bias
    ref_cplx = jax.lax.complex(ref_real, ref_imag)

    assert y_real.shape == (batch, seq, out_chans)
    assert y_cplx.shape == (batch, seq, out_chans)
    assert y_cplx.dtype == jnp.complex64
    assert jnp.allclose(y_real, ref_real, atol=1e-5, rtol=1e-5)
    assert jnp.allclose(y_cplx, ref_cplx, atol=1e-5, rtol=1e-5)

    print("KERNEL_OK")
</pallas_src>

<mosaic_0001>
module attributes {stable_mosaic.version = 11 : i64} {
  func.func @_fc_kernel(%arg0: i32, %arg1: i32, %arg2: i32, %arg3: memref<16x128xf32, #tpu.memory_space<vmem>>, %arg4: memref<128x128xf32, #tpu.memory_space<vmem>>, %arg5: memref<1x128xf32, #tpu.memory_space<vmem>>, %arg6: memref<16x128xf32, #tpu.memory_space<vmem>>, %arg7: memref<16x128xf32, #tpu.memory_space<vmem>>) attributes {dimension_semantics = [#tpu.dimension_semantics<parallel>, #tpu.dimension_semantics<parallel>, #tpu.dimension_semantics<arbitrary>], iteration_bounds = array<i64: 1, 1, 1>, scalar_prefetch = 0 : i64, scratch_operands = 1 : i64, tpu.core_type = #tpu.core_type<tc>, window_params = [{transform_indices = @transform_0, window_bounds = array<i64: 16, 128>}, {transform_indices = @transform_1, window_bounds = array<i64: 128, 128>}, {transform_indices = @transform_2, window_bounds = array<i64: 1, 128>}, {transform_indices = @transform_3, window_bounds = array<i64: 16, 128>}]} {
    %c0_i32 = arith.constant 0 : i32
    %0 = arith.cmpi eq, %arg2, %c0_i32 : i32
    %1 = arith.extui %0 : i1 to i32
    %c0_i32_0 = arith.constant 0 : i32
    %2 = arith.cmpi ne, %1, %c0_i32_0 : i32
    scf.if %2 {
      %cst_10 = arith.constant 0.000000e+00 : f32
      %12 = vector.broadcast %cst_10 : f32 to vector<16x128xf32>
      %c0_11 = arith.constant 0 : index
      %c0_12 = arith.constant 0 : index
      %13 = vector.load %arg7[%c0_11, %c0_12] : memref<16x128xf32, #tpu.memory_space<vmem>>, vector<16x128xf32>
      tpu.vector_store %arg7[%c0_11, %c0_12], %12 {strides = array<i32>} : memref<16x128xf32, #tpu.memory_space<vmem>>, vector<16x128xf32>,
    } else {
    }
    %c0 = arith.constant 0 : index
    %c0_1 = arith.constant 0 : index
    %3 = vector.load %arg7[%c0, %c0_1] : memref<16x128xf32, #tpu.memory_space<vmem>>, vector<16x128xf32>
    %c0_2 = arith.constant 0 : index
    %c0_3 = arith.constant 0 : index
    %4 = vector.load %arg3[%c0_2, %c0_3] : memref<16x128xf32, #tpu.memory_space<vmem>>, vector<16x128xf32>
    %c0_4 = arith.constant 0 : index
    %c0_5 = arith.constant 0 : index
    %5 = vector.load %arg4[%c0_4, %c0_5] : memref<128x128xf32, #tpu.memory_space<vmem>>, vector<128x128xf32>
    %cst = arith.constant dense<0.000000e+00> : vector<16x128xf32>
    %6 = tpu.matmul %4, %5, %cst {dimension_numbers = #tpu.dot_dimension_numbers<[1], [1], [0], [0], [0, 0, 1, 0], [], []>} : vector<16x128xf32>, vector<128x128xf32>, vector<16x128xf32> -> vector<16x128xf32>
    %7 = arith.addf %3, %6 : vector<16x128xf32>
    %c0_6 = arith.constant 0 : index
    %c0_7 = arith.constant 0 : index
    %8 = vector.load %arg7[%c0_6, %c0_7] : memref<16x128xf32, #tpu.memory_space<vmem>>, vector<16x128xf32>
    tpu.vector_store %arg7[%c0_6, %c0_7], %7 {strides = array<i32>} : memref<16x128xf32, #tpu.memory_space<vmem>>, vector<16x128xf32>,
    %c0_i32_8 = arith.constant 0 : i32
    %9 = arith.cmpi eq, %arg2, %c0_i32_8 : i32
    %10 = arith.extui %9 : i1 to i32
    %c0_i32_9 = arith.constant 0 : i32
    %11 = arith.cmpi ne, %10, %c0_i32_9 : i32
    scf.if %11 {
      %c0_10 = arith.constant 0 : index
      %c0_11 = arith.constant 0 : index
      %12 = vector.load %arg7[%c0_10, %c0_11] : memref<16x128xf32, #tpu.memory_space<vmem>>, vector<16x128xf32>
      %c0_12 = arith.constant 0 : index
      %c0_13 = arith.constant 0 : index
      %13 = vector.load %arg5[%c0_12, %c0_13] : memref<1x128xf32, #tpu.memory_space<vmem>>, vector<1x128xf32>
      %14 = vector.broadcast %13 : vector<1x128xf32> to vector<16x128xf32>
      %15 = arith.addf %12, %14 : vector<16x128xf32>
      %c0_14 = arith.constant 0 : index
      %c0_15 = arith.constant 0 : index
      %16 = vector.load %arg6[%c0_14, %c0_15] : memref<16x128xf32, #tpu.memory_space<vmem>>, vector<16x128xf32>
      tpu.vector_store %arg6[%c0_14, %c0_15], %15 {strides = array<i32>} : memref<16x128xf32, #tpu.memory_space<vmem>>, vector<16x128xf32>,
    } else {
    }
    return
  }
  func.func @transform_0(%arg0: i32, %arg1: i32, %arg2: i32) -> (i32, i32) {
    %c0_i32 = arith.constant 0 : i32
    return %arg0, %arg2 : i32, i32
  }
  func.func @transform_1(%arg0: i32, %arg1: i32, %arg2: i32) -> (i32, i32) {
    %c0_i32 = arith.constant 0 : i32
    return %arg1, %arg2 : i32, i32
  }
  func.func @transform_2(%arg0: i32, %arg1: i32, %arg2: i32) -> (i32, i32) {
    %c0_i32 = arith.constant 0 : i32
    %c0_i32_0 = arith.constant 0 : i32
    return %c0_i32, %arg1 : i32, i32
  }
  func.func @transform_3(%arg0: i32, %arg1: i32, %arg2: i32) -> (i32, i32) {
    %c0_i32 = arith.constant 0 : i32
    return %arg0, %arg1 : i32, i32
  }
}

</mosaic_0001>

<bundles_post_ra>
// kernel: fc_forward.1
= control target key start
LH: loop header
LB: loop body
LE: loop exit
PB: predicated region body
PF: predicated region fallthrough
CT: control target
= control target key end

     0   :  { %s276_s1 = inlined_call_operand.vmem [shape: f32[128,128], index: 1, kind: input, shape index: {}]   ;;  %s277_s0 = inlined_call_operand.vmem [shape: f32[16,128], index: 0, kind: input, shape index: {}]   ;;  %s278_s2 = inlined_call_operand.vmem [shape: f32[1,128], index: 2, kind: input, shape index: {}]   ;;  %s279_s3 = inlined_call_operand.vmem [shape: f32[16,128], index: 3, kind: output, shape index: {}]  }
   0x1   :  { %v39_v0 = vld [vmem:[%s276_s1 + $0x78] sm:$0xff]  ;;  %v38_v1 = vld [vmem:[%s276_s1 + $0x70] sm:$0xff]  ;;  %v37_v2 = vld [vmem:[%s276_s1 + $0x68] sm:$0xff] }
   0x2   :  { %158 = vmatprep.subr.mxu0 %v39_v0  ;;  %v22_v3 = vld [vmem:[%s277_s0] sm:$0xff]  ;;  %v35_v5 = vld [vmem:[%s276_s1 + $0x58] sm:$0xff]  ;;  %v34_v6 = vld [vmem:[%s276_s1 + $0x50] sm:$0xff] }
   0x3   :  { %159 = vmatpush3.xpose.msra.mxu0 %v39_v0  ;;  %190 = vmatprep.mubr.f32.mxu0 %v22_v3  ;;  %v36_v4 = vld [vmem:[%s276_s1 + $0x60] sm:$0xff]  ;;  %v33_v7 = vld [vmem:[%s276_s1 + $0x48] sm:$0xff]  ;;  %v31_v9 = vld [vmem:[%s276_s1 + $0x38] sm:$0xff] }
   0x4   :  { %160 = vmatprep.subr.mxu0 %v38_v1  ;;  %v32_v8 = vld [vmem:[%s276_s1 + $0x40] sm:$0xff]  ;;  %v30_v10 = vld [vmem:[%s276_s1 + $0x30] sm:$0xff]  ;;  %v29_v11 = vld [vmem:[%s276_s1 + $0x28] sm:$0xff] }
   0x5   :  { %v28_v12 = vld [vmem:[%s276_s1 + $0x20] sm:$0xff]  ;;  %v27_v13 = vld [vmem:[%s276_s1 + $0x18] sm:$0xff]  ;;  %v26_v14 = vld [vmem:[%s276_s1 + $0x10] sm:$0xff] }
   0x6   :  { %v25_v15 = vld [vmem:[%s276_s1 + $0x8] sm:$0xff]  ;;  %v24_v16 = vld [vmem:[%s276_s1] sm:$0xff] }
   0x7   :  { %161 = vmatpush3.xpose.msra.mxu0 %v38_v1  ;;  %v23_v17 = vld [vmem:[%s277_s0 + $0x8] sm:$0xff]  ;;  %v139_v18 = vld [vmem:[%s278_s2] ss:$0 sm:$0xff] }
   0x8   :  { %162 = vmatprep.subr.mxu0 %v37_v2 }
   0xb   :  { %163 = vmatpush3.xpose.msra.mxu0 %v37_v2 }
   0xc   :  { %164 = vmatprep.subr.mxu0 %v36_v4 }
   0xf   :  { %165 = vmatpush3.xpose.msra.mxu0 %v36_v4 }
  0x10   :  { %166 = vmatprep.subr.mxu0 %v35_v5 }
  0x13   :  { %167 = vmatpush3.xpose.msra.mxu0 %v35_v5 }
  0x14   :  { %168 = vmatprep.subr.mxu0 %v34_v6 }
  0x17   :  { %169 = vmatpush3.xpose.msra.mxu0 %v34_v6 }
  0x18   :  { %170 = vmatprep.subr.mxu0 %v33_v7 }
  0x1b   :  { %171 = vmatpush3.xpose.msra.mxu0 %v33_v7 }
  0x1c   :  { %172 = vmatprep.subr.mxu0 %v32_v8 }
  0x1f   :  { %173 = vmatpush3.xpose.msra.mxu0 %v32_v8 }
  0x20   :  { %174 = vmatprep.subr.mxu0 %v31_v9 }
  0x23   :  { %175 = vmatpush3.xpose.msra.mxu0 %v31_v9 }
  0x24   :  { %176 = vmatprep.subr.mxu0 %v30_v10 }
  0x27   :  { %177 = vmatpush3.xpose.msra.mxu0 %v30_v10 }
  0x28   :  { %178 = vmatprep.subr.mxu0 %v29_v11 }
  0x2b   :  { %179 = vmatpush3.xpose.msra.mxu0 %v29_v11 }
  0x2c   :  { %180 = vmatprep.subr.mxu0 %v28_v12 }
  0x2f   :  { %181 = vmatpush3.xpose.msra.mxu0 %v28_v12 }
  0x30   :  { %182 = vmatprep.subr.mxu0 %v27_v13 }
  0x33   :  { %183 = vmatpush3.xpose.msra.mxu0 %v27_v13 }
  0x34   :  { %184 = vmatprep.subr.mxu0 %v26_v14 }
  0x37   :  { %185 = vmatpush3.xpose.msra.mxu0 %v26_v14 }
  0x38   :  { %186 = vmatprep.subr.mxu0 %v25_v15 }
  0x3b   :  { %187 = vmatpush3.xpose.msra.mxu0 %v25_v15 }
  0x3c   :  { %188 = vmatprep.subr.mxu0 %v24_v16 }
  0x3f   :  { %189 = vmatpush3.xpose.msra.mxu0 %v24_v16 }
  0x42   :  { %191 = vmatmul.mubr.f32.vlgmr.msra.gmra.mxu0 %v23_v17 }
 0x102   :  { %v192_v19 = vpop.f32.mrf.mxu0 }
 0x103   :  { %v132_v20 = vadd.f32 %v192_v19, %v139_v18 }
 0x104   :  { %v106_v21 = vpop.f32.mrf.mxu0 }
 0x105   :  { %134 = vst [vmem:[%s279_s3 + $0x8] sm:$0xff] %v132_v20  ;;  %v131_v22 = vadd.f32 %v139_v18, %v106_v21 }
 0x107   :  { %133 = vst [vmem:[%s279_s3] sm:$0xff] %v131_v22 }

</bundles_post_ra>
